<compile_context>
chip_gen: v7x
topology: tpu7x:2x2x1
jax: 0.10.0
libtpu: 0.0.40
codegen_flags: <defaults>
</compile_context>

<pallas_src>
import functools

import jax
import jax.numpy as jnp
from jax import lax
from jax.experimental import pallas as pl
from jax.experimental.pallas import tpu as pltpu


def _pick_tile(n, preferred, multiple):
    """Largest tile <= preferred that is a multiple of `multiple` and divides n.
    Falls back to the full dimension (which is always legal for BlockSpecs)."""
    if n <= preferred:
        return n
    t = preferred - (preferred % multiple)
    while t >= multiple:
        if n % t == 0:
            return t
        t -= multiple
    return n


# ---------------------------------------------------------------------------
# Linear projection:  y[b, l, :] = x[b, l, :] @ W      (W is (D_in, D_out))
# ---------------------------------------------------------------------------
def _linear_kernel(x_ref, w_ref, o_ref):
    o_ref[0] = jnp.dot(x_ref[0], w_ref[...],
                       preferred_element_type=jnp.float32).astype(o_ref.dtype)


def _linear(x, w, *, seq_tile, out_dtype):
    B, L, d_in = x.shape
    d_out = w.shape[1]
    tl = _pick_tile(L, seq_tile, 8)
    return pl.pallas_call(
        _linear_kernel,
        out_shape=jax.ShapeDtypeStruct((B, L, d_out), out_dtype),
        grid_spec=pltpu.PrefetchScalarGridSpec(
            num_scalar_prefetch=0,
            grid=(B, L // tl),
            in_specs=[
                pl.BlockSpec((1, tl, d_in), lambda b, i: (b, i, 0)),
                # Whole weight resident in VMEM, single-buffered (grid-invariant)
                # instead of a double-buffered full-size block.
                pl.BlockSpec(memory_space=pltpu.MemorySpace.VMEM),
            ],
            out_specs=pl.BlockSpec((1, tl, d_out), lambda b, i: (b, i, 0)),
        ),
        compiler_params=pltpu.CompilerParams(
            dimension_semantics=("parallel", "parallel")),
    )(x, w)


# ---------------------------------------------------------------------------
# Flash attention (online softmax) over KV tiles; all heads per grid step via
# static column slices of the (T, d_model) tiles.
# ---------------------------------------------------------------------------
def _flash_attn_kernel(q_ref, k_ref, v_ref, mask_ref, o_ref, lse_ref,
                       m_sc, l_sc, acc_sc, *, n_head, d_head, scale):
    ki = pl.program_id(2)

    @pl.when(ki == 0)
    def _init():
        m_sc[...] = jnp.full_like(m_sc, -1e30)
        l_sc[...] = jnp.zeros_like(l_sc)
        acc_sc[...] = jnp.zeros_like(acc_sc)

    q = q_ref[0]                                   # (TQ, d_model)
    k = k_ref[0]                                   # (TK, d_model)
    v = v_ref[0]                                   # (TK, d_model)
    mask = mask_ref[0].astype(jnp.float32)         # (TQ, TK), additive

    for h in range(n_head):
        cols = slice(h * d_head, (h + 1) * d_head)
        hcol = slice(h, h + 1)
        qh = q[:, cols]                            # (TQ, d_head)
        kh = k[:, cols]                            # (TK, d_head)
        vh = v[:, cols]                            # (TK, d_head)

        # Scores (TQ, TK): contract the d_head axes directly (no K transpose).
        s = lax.dot_general(qh, kh, (((1,), (1,)), ((), ())),
                            preferred_element_type=jnp.float32)
        s = s * scale + mask

        m_prev = m_sc[:, hcol]                     # (TQ, 1)
        m_new = jnp.maximum(m_prev, jnp.max(s, axis=-1, keepdims=True))
        alpha = jnp.exp(m_prev - m_new)
        p = jnp.exp(s - m_new)
        l_sc[:, hcol] = alpha * l_sc[:, hcol] + jnp.sum(p, axis=-1, keepdims=True)
        acc_sc[:, cols] = alpha * acc_sc[:, cols] + jnp.dot(
            p.astype(vh.dtype), vh, preferred_element_type=jnp.float32)
        m_sc[:, hcol] = m_new

    @pl.when(ki == pl.num_programs(2) - 1)
    def _finalize():
        for h in range(n_head):
            cols = slice(h * d_head, (h + 1) * d_head)
            hcol = slice(h, h + 1)
            inv_l = pl.reciprocal(l_sc[:, hcol], approx=True)   # EUP slot
            o_ref[0, :, cols] = (acc_sc[:, cols] * inv_l).astype(o_ref.dtype)
        lse_ref[0] = (m_sc[...] + jnp.log(l_sc[...])).astype(lse_ref.dtype)


# ---------------------------------------------------------------------------
# Optional second pass: materialize the full attention weights from the
# log-sum-exp produced by the flash pass (writeback-bound by construction).
# ---------------------------------------------------------------------------
def _attn_weights_kernel(q_ref, k_ref, mask_ref, lse_ref, attn_ref,
                         *, n_head, d_head, scale):
    q = q_ref[0]                                   # (TQ, d_model)
    k = k_ref[0]                                   # (TK, d_model)
    mask = mask_ref[0].astype(jnp.float32)         # (TQ, TK)
    lse = lse_ref[0]                               # (TQ, n_head), f32
    for h in range(n_head):
        cols = slice(h * d_head, (h + 1) * d_head)
        s = lax.dot_general(q[:, cols], k[:, cols], (((1,), (1,)), ((), ())),
                            preferred_element_type=jnp.float32)
        s = s * scale + mask
        attn_ref[0, h] = jnp.exp(s - lse[:, h:h + 1]).astype(attn_ref.dtype)


# ---------------------------------------------------------------------------
# Public wrapper
# ---------------------------------------------------------------------------
def multi_head_attention(queries, keys, values, attention_mask,
                         wq, wk, wv, wo, *, n_head,
                         return_attn_weights=True,
                         compute_dtype=None,
                         attn_weight_dtype=jnp.float32,
                         q_tile=128, kv_tile=128, proj_seq_tile=256):
    """queries/keys/values: (B, L, d_*); attention_mask: (B, L, L) additive
    (or None). wq/wk/wv: (d_*, d_model); wo: (d_model, d_model).
    Returns dict(out=(B, L, d_model), attn_weight=(B, n_head, L, L) or None).

    compute_dtype=jnp.bfloat16 runs all matmuls in bf16 (f32 accumulation);
    return_attn_weights=False skips the quadratic attention-map writeback."""
    B, L, _ = queries.shape
    d_model = wq.shape[1]
    assert d_model % n_head == 0, "d_model must be divisible by n_head"
    d_head = d_model // n_head
    scale = float(d_head) ** -0.5

    in_dtype = queries.dtype
    cdt = jnp.dtype(compute_dtype) if compute_dtype is not None else jnp.dtype(in_dtype)

    if attention_mask is None:
        attention_mask = jnp.zeros((B, L, L), dtype=jnp.float32)

    # ---- Projections ----
    Q = _linear(queries.astype(cdt), wq.astype(cdt), seq_tile=proj_seq_tile, out_dtype=cdt)
    K = _linear(keys.astype(cdt),    wk.astype(cdt), seq_tile=proj_seq_tile, out_dtype=cdt)
    V = _linear(values.astype(cdt),  wv.astype(cdt), seq_tile=proj_seq_tile, out_dtype=cdt)

    # ---- Flash attention ----
    tq = _pick_tile(L, q_tile, 8)      # sublane-aligned q tile
    tk = _pick_tile(L, kv_tile, 128)   # lane-aligned kv tile (last dim of mask/attn)

    flash = functools.partial(_flash_attn_kernel,
                              n_head=n_head, d_head=d_head, scale=scale)
    ctx, lse = pl.pallas_call(
        flash,
        out_shape=(jax.ShapeDtypeStruct((B, L, d_model), cdt),
                   jax.ShapeDtypeStruct((B, L, n_head), jnp.float32)),
        grid_spec=pltpu.PrefetchScalarGridSpec(
            num_scalar_prefetch=0,
            grid=(B, L // tq, L // tk),
            in_specs=[
                pl.BlockSpec((1, tq, d_model), lambda b, qi, ki: (b, qi, 0)),
                pl.BlockSpec((1, tk, d_model), lambda b, qi, ki: (b, ki, 0)),
                pl.BlockSpec((1, tk, d_model), lambda b, qi, ki: (b, ki, 0)),
                pl.BlockSpec((1, tq, tk),      lambda b, qi, ki: (b, qi, ki)),
            ],
            out_specs=[
                pl.BlockSpec((1, tq, d_model), lambda b, qi, ki: (b, qi, 0)),
                pl.BlockSpec((1, tq, n_head),  lambda b, qi, ki: (b, qi, 0)),
            ],
            scratch_shapes=[
                pltpu.VMEM((tq, n_head), jnp.float32),   # running max m
                pltpu.VMEM((tq, n_head), jnp.float32),   # running denom l
                pltpu.VMEM((tq, d_model), jnp.float32),  # running weighted sum
            ],
        ),
        compiler_params=pltpu.CompilerParams(
            dimension_semantics=("parallel", "parallel", "arbitrary")),
    )(Q, K, V, attention_mask)

    # ---- Output projection ----
    out = _linear(ctx, wo.astype(cdt), seq_tile=proj_seq_tile, out_dtype=in_dtype)

    # ---- Optional full attention-weights map ----
    attn_w = None
    if return_attn_weights:
        aw = functools.partial(_attn_weights_kernel,
                               n_head=n_head, d_head=d_head, scale=scale)
        attn_w = pl.pallas_call(
            aw,
            out_shape=jax.ShapeDtypeStruct((B, n_head, L, L), attn_weight_dtype),
            grid_spec=pltpu.PrefetchScalarGridSpec(
                num_scalar_prefetch=0,
                grid=(B, L // tq, L // tk),
                in_specs=[
                    pl.BlockSpec((1, tq, d_model), lambda b, qi, ki: (b, qi, 0)),
                    pl.BlockSpec((1, tk, d_model), lambda b, qi, ki: (b, ki, 0)),
                    pl.BlockSpec((1, tq, tk),      lambda b, qi, ki: (b, qi, ki)),
                    pl.BlockSpec((1, tq, n_head),  lambda b, qi, ki: (b, qi, 0)),
                ],
                out_specs=pl.BlockSpec((1, n_head, tq, tk),
                                       lambda b, qi, ki: (b, 0, qi, ki)),
            ),
            compiler_params=pltpu.CompilerParams(
                dimension_semantics=("parallel", "parallel", "parallel")),
        )(Q, K, attention_mask, lse)

    return {'out': out, 'attn_weight': attn_w}


# ---------------------------------------------------------------------------
# Pure-JAX reference (matches the PyTorch module's forward for plain MHA).
# ---------------------------------------------------------------------------
def _reference(queries, keys, values, attention_mask, wq, wk, wv, wo, n_head):
    B, L, _ = queries.shape
    d_model = wq.shape[1]
    d_head = d_model // n_head
    Q = queries @ wq
    K = keys @ wk
    V = values @ wv
    split = lambda M: M.reshape(B, L, n_head, d_head).transpose(0, 2, 1, 3)
    Qh, Kh, Vh = split(Q), split(K), split(V)
    scores = jnp.einsum('bhld,bhmd->bhlm', Qh, Kh) / jnp.sqrt(jnp.float32(d_head))
    scores = scores + attention_mask[:, None, :, :]
    attn = jax.nn.softmax(scores, axis=-1)
    ctx = jnp.einsum('bhlm,bhmd->bhld', attn, Vh)
    merged = ctx.transpose(0, 2, 1, 3).reshape(B, L, d_model)
    return merged @ wo, attn


def _run_case(*, B, L, d_q, d_k, d_v, d_model, n_head, mask_kind, seed,
              out_tol, attn_tol):
    key = jax.random.PRNGKey(seed)
    kq, kk, kv, kwq, kwk, kwv, kwo = jax.random.split(key, 7)
    queries = jax.random.normal(kq, (B, L, d_q), dtype=jnp.float32)
    keys_in = jax.random.normal(kk, (B, L, d_k), dtype=jnp.float32)
    values = jax.random.normal(kv, (B, L, d_v), dtype=jnp.float32)
    # Deterministic parameter init (qkv_bias=False), pre-transposed (D_in, D_model).
    wq = jax.random.normal(kwq, (d_q, d_model), dtype=jnp.float32) * 0.1
    wk = jax.random.normal(kwk, (d_k, d_model), dtype=jnp.float32) * 0.1
    wv = jax.random.normal(kwv, (d_v, d_model), dtype=jnp.float32) * 0.1
    wo = jax.random.normal(kwo, (d_model, d_model), dtype=jnp.float32) * 0.1

    if mask_kind == "none":
        attention_mask = jnp.zeros((B, L, L), dtype=jnp.float32)
    else:  # additive causal mask (large-negative, not -inf)
        idx = jnp.arange(L)
        causal = jnp.where(idx[None, :] <= idx[:, None], 0.0, -1e9)
        attention_mask = jnp.broadcast_to(causal, (B, L, L)).astype(jnp.float32)

    result = multi_head_attention(queries, keys_in, values, attention_mask,
                                  wq, wk, wv, wo, n_head=n_head)
    out = jax.block_until_ready(result['out'])
    attn_w = jax.block_until_ready(result['attn_weight'])

    ref_out, ref_attn = _reference(queries, keys_in, values, attention_mask,
                                   wq, wk, wv, wo, n_head)
    assert out.shape == (B, L, d_model)
    assert attn_w.shape == (B, n_head, L, L)
    assert jnp.allclose(out, ref_out, atol=out_tol, rtol=out_tol), \
        f"out max err {float(jnp.max(jnp.abs(out - ref_out)))}"
    assert jnp.allclose(attn_w, ref_attn, atol=attn_tol, rtol=attn_tol), \
        f"attn max err {float(jnp.max(jnp.abs(attn_w - ref_attn)))}"


if __name__ == "__main__":
    # Small shapes consistent with the module's forward (single q/kv tile).
    _run_case(B=2, L=8, d_q=16, d_k=16, d_v=16, d_model=32, n_head=2,
              mask_kind="none", seed=0, out_tol=5e-3, attn_tol=2e-3)
    # Multi-tile case: exercises the online-softmax KV loop (2 q-tiles x
    # 2 kv-tiles of 128) and a causal additive mask.
    _run_case(B=1, L=256, d_q=24, d_k=24, d_v=24, d_model=64, n_head=4,
              mask_kind="causal", seed=1, out_tol=1e-2, attn_tol=5e-3)
    print("KERNEL_OK")
</pallas_src>

<mosaic_0001>
module attributes {stable_mosaic.version = 11 : i64} {
  func.func @_linear_kernel(%arg0: i32, %arg1: i32, %arg2: memref<1x8x16xf32, #tpu.memory_space<vmem>>, %arg3: memref<16x32xf32, #tpu.memory_space<vmem>>, %arg4: memref<1x8x32xf32, #tpu.memory_space<vmem>>) attributes {dimension_semantics = [#tpu.dimension_semantics<parallel>, #tpu.dimension_semantics<parallel>], iteration_bounds = array<i64: 2, 1>, scalar_prefetch = 0 : i64, scratch_operands = 0 : i64, tpu.core_type = #tpu.core_type<tc>, window_params = [{transform_indices = @transform_0, window_bounds = array<i64: 1, 8, 16>}, {pipeline_mode = #tpu.pipeline_mode<synchronous>, transform_indices = @transform_1, window_bounds = array<i64: 16, 32>}, {transform_indices = @transform_2, window_bounds = array<i64: 1, 8, 32>}]} {
    %c0 = arith.constant 0 : index
    %c0_0 = arith.constant 0 : index
    %c0_1 = arith.constant 0 : index
    %0 = vector.load %arg2[%c0, %c0_0, %c0_1] : memref<1x8x16xf32, #tpu.memory_space<vmem>>, vector<1x8x16xf32>
    %1 = vector.shape_cast %0 : vector<1x8x16xf32> to vector<8x16xf32>
    %c0_2 = arith.constant 0 : index
    %c0_3 = arith.constant 0 : index
    %2 = vector.load %arg3[%c0_2, %c0_3] : memref<16x32xf32, #tpu.memory_space<vmem>>, vector<16x32xf32>
    %cst = arith.constant dense<0.000000e+00> : vector<8x32xf32>
    %3 = tpu.matmul %1, %2, %cst {dimension_numbers = #tpu.dot_dimension_numbers<[1], [0], [0], [1], [0, 0, 1, 1], [], []>} : vector<8x16xf32>, vector<16x32xf32>, vector<8x32xf32> -> vector<8x32xf32>
    %c0_4 = arith.constant 0 : index
    %c0_5 = arith.constant 0 : index
    %c0_6 = arith.constant 0 : index
    %4 = vector.load %arg4[%c0_4, %c0_5, %c0_6] : memref<1x8x32xf32, #tpu.memory_space<vmem>>, vector<1x8x32xf32>
    %5 = vector.shape_cast %4 : vector<1x8x32xf32> to vector<8x32xf32>
    %6 = vector.shape_cast %3 : vector<8x32xf32> to vector<1x8x32xf32>
    tpu.vector_store %arg4[%c0_4, %c0_5, %c0_6], %6 {strides = array<i32>} : memref<1x8x32xf32, #tpu.memory_space<vmem>>, vector<1x8x32xf32>,
    return
  }
  func.func @transform_0(%arg0: i32, %arg1: i32) -> (i32, i32, i32) {
    %c0_i32 = arith.constant 0 : i32
    %c0_i32_0 = arith.constant 0 : i32
    return %arg0, %arg1, %c0_i32 : i32, i32, i32
  }
  func.func @transform_1(%arg0: i32, %arg1: i32) -> (i32, i32) {
    %c0_i32 = arith.constant 0 : i32
    %c0_i32_0 = arith.constant 0 : i32
    %c0_i32_1 = arith.constant 0 : i32
    return %c0_i32, %c0_i32_0 : i32, i32
  }
  func.func @transform_2(%arg0: i32, %arg1: i32) -> (i32, i32, i32) {
    %c0_i32 = arith.constant 0 : i32
    %c0_i32_0 = arith.constant 0 : i32
    return %arg0, %arg1, %c0_i32 : i32, i32, i32
  }
}

</mosaic_0001>

<bundles_post_ra>
// kernel: tpu_custom_call.1
= control target key start
LH: loop header
LB: loop body
LE: loop exit
PB: predicated region body
PF: predicated region fallthrough
CT: control target
= control target key end

     0   :  { %7 = vsyncpa [#allocation3], 0  ;;  %s865_s0 = inlined_call_operand.hbm [shape: f32[2,8,16], index: 0, kind: input, shape index: {}]   ;;  %s866_s1 = inlined_call_operand.hbm [shape: f32[16,32], index: 1, kind: input, shape index: {}]   ;;  %s867_s2 = inlined_call_operand.hbm [shape: f32[2,8,32], index: 2, kind: output, shape index: {}]  }
   0x1   :  { %9 = vsyncpa [#allocation3 + $0x1], 0 }
   0x2   :  { %10 = vsyncpa [#allocation6], 0 }
   0x3   :  { %11 = vsyncpa [#allocation4], 0 }
   0x4   :  { %13 = vsyncpa [#allocation4 + $0x1], 0  ;;  %s651_s9 = smov 0   ;;  %s653_s10 = smov 0  }
   0x5   :  { %s655_s11 = smov 0   ;;  %s657_s12 = smov 0  }
   0x6   :  { %s659_s13 = smov 0   ;;  %s661_s14 = smov 0  }
   0x7 LB: > { %s375_s15 = sadd.s32 4294967295, %s626_s14   ;;  %s376_s16 = sadd.s32 4294967294, %s626_s14   ;;  %s626_s14 = sphi %s661_s14, %s19_s14   ;;  %s622_s13 = sphi %s659_s13, %s891_s13   ;;  %s618_s12 = sphi %s657_s12, %s890_s12   ;;  %s614_s11 = sphi %s655_s11, %s889_s11   ;;  %s610_s10 = sphi %s653_s10, %s888_s10   ;;  %s606_s9 = sphi %s651_s9, %s887_s9  }
   0x8   : > { %p53_p0 = scmp.ne.s32.totalorder %s610_s10, %s606_s9  ;;  %p685_p1 = scmp.eq.s32.totalorder %s375_s15, 0 }
   0x9   : > { %p689_p2 = scmp.eq.s32.totalorder %s375_s15, 1  ;;  %p106_p3 = scmp.eq.s32.totalorder %s376_s16, 1 }
   0xa   : > { %s872_s17 = scalar_select %p685_p1, 1, 0 }
   0xb   : > { %s873_s18 = scalar_select %p689_p2, 1, 0 }
   0xc   : > { %p695_p4 = por %p685_p1, %p53_p0  ;;  %p377_p5 = scmp.ge.s32.totalorder %s626_s14, 1 }
   0xd   : > { %p700_p6 = por %p106_p3, %p53_p0  ;;  %p113_p7 = scmp.lt.s32.totalorder %s626_s14, 3 }
   0xe   : > { %s874_s19 = scalar_select %p695_p4, 1, 0 }
   0xf   : > { %s875_s20 = scalar_select %p700_p6, 1, 0 }
  0x10   : > { %p705_p8 = pnand %p377_p5, %p113_p7  ;;  %s628_s22 = smov [#allocation5]  }
  0x11   : > { %s125_s23 = sshll.u32 %s628_s22, 4  ;;  %s31_s25 = sadd.s32 1, %s622_s13  ;;  %s126_s23 = int_to_ptr.vmem [resolvable:$true] %s125_s23 }
  0x12   : > { %s876_s21 = scalar_select %p705_p8, 1, 0 }
  0x13   : > { %p412_p9 = pneg %p705_p8  ;;  %s482_s28 = scalar_lea.hbm %s866_s1, 256 }
  0x14   : > { %p483_p12 = scmp.ne.s32.totalorder %s866_s1, %s482_s28  ;;  %p489_p5 = scmp.lt.u32.totalorder %s482_s28, %s866_s1 }
  0x15   : > { %p714_p11 = pnand %p412_p9, %p685_p1 }
  0x17   : > { %p484_p13 = pneg %p714_p11 }
  0x19   : > { %p485_p0 = pnand %p484_p13, %p483_p12 }
  0x1b   : > { %p486_p3 = pneg %p485_p0 }
  0x1d   : > { %p491_p7 = pnand %p489_p5, %p486_p3 }
  0x1f   : > { %494 = shalt.err (!%p491_p7)
}
  0x20   : > { %s495_s5 = scalar_lea.vmem %s126_s23, 256  ;;  %p503_p1 = scmp.lt.s32.totalorder %s126_s23, %s126_s23 }
  0x21   : > { %p496_p9 = scmp.ne.s32.totalorder %s126_s23, %s495_s5  ;;  %p504_p4 = scmp.lt.s32.totalorder %s495_s5, %s495_s5 }
  0x23   : > { %p498_p10 = pnand %p496_p9, %p484_p13  ;;  %p505_p8 = por %p504_p4, %p503_p1 }
  0x25   : > { %p499_p6 = pneg %p498_p10 }
  0x27   : > { %p506_p2 = pnand %p505_p8, %p499_p6 }
  0x29   : > { %509 = shalt.err (!%p506_p2)
}
  0x2a   : > { %s629_s6 = smov 128   ;;  %s630_s7 = smov 8  }
  0x2b   : > { %415 = dma.hbm_to_vmem [thread:$0]  (!%p714_p11), %s866_s1, 256, %s126_s23, [#allocation6], %s629_s6, %s629_s6, %s630_s7  }
  0x2c   : > { %p33_p1 = scmp.ge.s32.totalorder %s31_s25, 2  ;;  %s40_s16 = sadd.s32 1, %s614_s11 }
  0x2d   : > { %p47_p2 = scmp.ne.s32.totalorder %s614_s11, %s610_s10  ;;  %p48_p4 = scmp.eq.s32.totalorder %s626_s14, 0 }
  0x2e   : > { %s893_s25 = smov (%p33_p1, %s31_s25), 0  ;;  %p879_p8 = scmp.ne.s32.totalorder %s873_s18, 0 }
  0x2f   : > { %p741_p6 = por %p48_p4, %p47_p2  ;;  %s35_s24 = ssub.s32 %s622_s13, %s893_s25 }
  0x30   : > { %p747_p10 = por %p879_p8, %p47_p2  ;;  %p425_p12 = scmp.lt.s32.totalorder %s626_s14, 2 }
  0x31   : > { %p38_p11 = scmp.eq.s32.totalorder %s35_s24, 0  ;;  %s139_s23 = sand.u32 1, %s614_s11  }
  0x32   : > { %s380_s27 = sshll.u32 %s139_s23, 3  ;;  %s381_s29 = sshll.u32 %s622_s13, 7 }
  0x33   : > { %s756_s28 = scalar_select %p38_p11, %s614_s11, %s40_s16  }
  0x34   : > { %s762_s4 = scalar_lea.hbm %s865_s0, %s381_s29  ;;  %s143_s18 = scalar_lea.vmem [#allocation2], %s380_s27 }
  0x35   : > { %s151_s5 = sshll.u32 %s143_s18, 4  ;;  %p768_p13 = pnand %p425_p12, %p741_p6  ;;  %s764_s5 = int_to_ptr.vmem [resolvable:$true] %s151_s5 }
  0x36   : > { %s140_s7 = scalar_lea.sflag [#allocation3], %s139_s23  ;;  %s510_s8 = scalar_lea.hbm %s762_s4, 128 }
  0x37   : > { %p511_p0 = scmp.ne.s32.totalorder %s762_s4, %s510_s8  ;;  %p512_p3 = pneg %p768_p13 }
  0x38   : > { %s515_s24 = scalar_lea.hbm %s865_s0, 256  ;;  %p516_p9 = scmp.lt.u32.totalorder %s762_s4, %s865_s0 }
  0x39   : > { %p513_p5 = pnand %p512_p3, %p511_p0  ;;  %p517_p1 = scmp.lt.u32.totalorder %s515_s24, %s510_s8 }
  0x3a   : > { %p519_p4 = scmp.lt.u32.totalorder %s510_s8, %s762_s4 }
  0x3b   : > { %p514_p7 = pneg %p513_p5  ;;  %p518_p2 = por %p517_p1, %p516_p9 }
  0x3d   : > { %p520_p6 = por %p519_p4, %p518_p2 }
  0x3f   : > { %p521_p8 = pnand %p520_p6, %p514_p7 }
  0x41   : > { %524 = shalt.err (!%p521_p8)
}
  0x42   : > { %s525_s23 = scalar_lea.vmem %s764_s5, 128  ;;  %s631_s29 = smov [#allocation2]  }
  0x43   : > { %p526_p12 = scmp.ne.s32.totalorder %s764_s5, %s525_s23  ;;  %s530_s30 = sshll.u32 %s631_s29, 4  ;;  %s531_s30 = int_to_ptr.vmem [resolvable:$false] %s530_s30 }
  0x44   : > { %s532_s3 = scalar_lea.vmem %s531_s30, 256  ;;  %p533_p5 = scmp.lt.s32.totalorder %s764_s5, %s531_s30 }
  0x45   : > { %p528_p11 = pnand %p526_p12, %p512_p3  ;;  %p534_p9 = scmp.lt.s32.totalorder %s532_s3, %s525_s23 }
  0x47   : > { %p529_p0 = pneg %p528_p11  ;;  %p535_p1 = por %p534_p9, %p533_p5 }
  0x49   : > { %p536_p2 = pnand %p535_p1, %p529_p0 }
  0x4b   : > { %539 = shalt.err (!%p536_p2)
}
  0x4c   : > { %419 = dma.hbm_to_vmem [thread:$0]  (!%p768_p13), %s762_s4, 128, %s764_s5, %s140_s7  }
  0x4d   : > { %p882_p7 = scmp.ne.s32.totalorder %s876_s21, 0 }
  0x4e   : > { %s800_s18 = sand.u32 (!%p882_p7), 1, %s610_s10   ;;  %p883_p3 = scmp.ne.s32.totalorder (!%p882_p7), %s874_s19, 0 }
  0x4f   : > { %160 = sbr.rel (%p882_p7) target bundleno = 323 (0x143), region = 28  ;;  %s383_s8 = sshll.u32 (!%p882_p7), %s800_s18, 3 }
  0x50   : > { %s163_s15 = scalar_lea.sflag (!%p882_p7), [#allocation3], %s800_s18  ;;  %s166_s16 = scalar_lea.vmem (!%p882_p7), [#allocation2], %s383_s8 }
  0x56   : > { %593 = dma.done.wait (%p883_p3), %s163_s15, 128  }
  0x57   : > { %595 = vsyncadd (%p883_p3), %s163_s15, 4294967168  ;;  %p884_p4 = scmp.ne.s32.totalorder %s872_s17, 0 }
  0x59   : > { %597 = dma.done.wait (%p884_p4), [#allocation6], 256  }
  0x5a   : > { %599 = vsyncadd (%p884_p4), [#allocation6], 4294967040  ;;  %v632_v0 = vmov 0.0|0.0   ;;  %vm633_vm0 = vmmov 0   ;;  %v634_v1 = vmov 0.0   ;;  %v192_v2 = vld [vmem:[#allocation5] sm:$0xff] }
  0x5b   : > { %401 = vmatprep.subr.bf16.mxu0 %v632_v0  ;;  %398 = vmatprep.mubr.msk.f32.mxu0 %vm633_vm0, %v634_v1  ;;  %v193_v3 = vld [vmem:[#allocation5 + $0x8] sm:$0xff]  ;;  %v191_v5 = vld [vmem:[%s166_s16] sm:$0xff]  ;;  %vm194_vm1 = vcmask 130048   ;;  %s388_s19 = sshll.u32 %s618_s12, 7  ;;  %s190_s21 = scalar_lea.vmem [#allocation7], %s383_s8  ;;  %vm268_vm2 = vcmask 261120  }
  0x5c   : > { %v402_v4 = vpack.c.bf16 %v193_v3, %v192_v2  ;;  %s285_s4 = sshll.u32 %s190_s21, 4  ;;  %s816_s6 = scalar_lea.hbm %s867_s2, %s388_s19  ;;  %s818_s4 = int_to_ptr.vmem [resolvable:$true] %s285_s4 }
  0x5d   : > { %s271_s7 = scalar_lea.sflag [#allocation4], %s800_s18  ;;  %s540_s24 = scalar_lea.vmem %s818_s4, 128 }
  0x5e   : > { %403 = vmatpush3.bf16.msra.mxu0 %v402_v4  ;;  %p541_p13 = scmp.ne.s32.totalorder %s818_s4, %s540_s24  ;;  %s635_s12 = smov [#allocation7]  }
  0x5f   : > { %s544_s22 = sshll.u32 %s635_s12, 4  ;;  %s545_s22 = int_to_ptr.vmem [resolvable:$false] %s544_s22 }
  0x60   : > { %p542_p6 = pnand %p541_p13, %p747_p10  ;;  %s546_s27 = scalar_lea.vmem %s545_s22, 256 }
  0x61   : > { %399 = vmatmul.mubr.msk.f32.vlgmr.msra.gmra.mrb[0].mxu0 %vm194_vm1, %v191_v5  ;;  %p547_p12 = scmp.lt.s32.totalorder %s818_s4, %s545_s22  ;;  %p548_p11 = scmp.lt.s32.totalorder %s546_s27, %s540_s24 }
  0x62   : > { %p543_p8 = pneg %p542_p6 }
  0x63   : > { %p549_p0 = por %p548_p11, %p547_p12 }
  0x65   : > { %p550_p5 = pnand %p549_p0, %p543_p8 }
 0x134   : > { %v264_v6 = vpop.f32.mrb[0].mxu0 }
 0x135   : > { %269 = vst.msk [vmem:[%s190_s21] sm:$0xff] %vm268_vm2, %v264_v6  ;;  %v400_v7 = vpop.f32.mrb[1].mxu0 }
 0x136   : > { %553 = shalt.err (!%p550_p5)
}
 0x137   : > { %s554_s23 = scalar_lea.hbm %s816_s6, 128  ;;  %s558_s3 = scalar_lea.hbm %s867_s2, 256 }
 0x138   : > { %p555_p9 = scmp.ne.s32.totalorder %s816_s6, %s554_s23  ;;  %p559_p7 = scmp.lt.u32.totalorder %s816_s6, %s867_s2 }
 0x139   : > { %p560_p3 = scmp.lt.u32.totalorder %s558_s3, %s554_s23  ;;  %p562_p13 = scmp.lt.u32.totalorder %s554_s23, %s816_s6 }
 0x13a   : > { %p556_p1 = pnand %p555_p9, %p747_p10 }
 0x13b   : > { %p561_p4 = por %p560_p3, %p559_p7 }
 0x13c   : > { %p557_p2 = pneg %p556_p1 }
 0x13d   : > { %p563_p6 = por %p562_p13, %p561_p4 }
 0x13f   : > { %p564_p8 = pnand %p563_p6, %p557_p2 }
 0x141   : > { %567 = shalt.err (!%p564_p8)
}
 0x142   : > { %410 = dma.vmem_to_hbm [thread:$0]  (%p747_p10), %s818_s4, 128, %s816_s6, %s271_s7  }
 0x143 PF: > { %s297_s15 = sand.u32 1, %s606_s9   ;;  %p885_p12 = scmp.ne.s32.totalorder %s875_s20, 0 }
 0x144   : > { %p886_p11 = scmp.ge.s32.totalorder %s626_s14, 2  ;;  %s298_s16 = scalar_lea.sflag [#allocation4], %s297_s15 }
 0x146   : > { %p421_p0 = pnand %p886_p11, %p885_p12 }
 0x148   : > { %601 = dma.done.wait (!%p421_p0), %s298_s16, 128  }
 0x149   : > { %603 = vsyncadd (!%p421_p0), %s298_s16, 4294967168  ;;  %s19_s14 = sadd.s32 1, %s626_s14   ;;  %s887_s9 = smov %s610_s10 }
 0x14a   : > { %p16_p5 = scmp.ge.s32.totalorder %s19_s14, 4   ;;  %s888_s10 = smov %s614_s11 }
 0x14b   : > { %s889_s11 = smov %s756_s28  ;;  %s890_s12 = smov %s622_s13 }
 0x14c   : > { %s891_s13 = smov %s893_s25  ;;  %18 = sbr.rel (!%p16_p5) target bundleno = 7 (0x7), region = 77 }
 0x153   :  { %303 = vsyncpa [#allocation3], 1 }
 0x154   :  { %305 = vsyncpa [#allocation3 + $0x1], 1 }
 0x155   :  { %306 = vsyncpa [#allocation6], 1 }
 0x156   :  { %307 = vsyncpa [#allocation4], 1 }
 0x157   :  { %309 = vsyncpa [#allocation4 + $0x1], 1 }

</bundles_post_ra>
